<compile_context>
chip_gen: v6e
topology: v6e:2x2x1
jax: 0.10.0
libtpu: 0.0.40
codegen_flags: <defaults>
</compile_context>

<pallas_src>
import functools

import numpy as np
import jax
import jax.numpy as jnp
from jax.experimental import pallas as pl
from jax.experimental.pallas import tpu as pltpu


# ----------------------------------------------------------------------------
# Linear + LeakyReLU kernel
# ----------------------------------------------------------------------------
def _linear_lrelu_kernel(x_ref, w_ref, b_ref, o_ref, *, negative_slope):
    y = jnp.dot(x_ref[...], w_ref[...], preferred_element_type=jnp.float32)
    y = y + b_ref[...]
    o_ref[...] = jnp.where(y >= 0, y, negative_slope * y).astype(o_ref.dtype)


def linear_lrelu(x, w, b, *, negative_slope=0.01, out_dtype=jnp.bfloat16):
    B = x.shape[0]
    N = w.shape[1]
    return pl.pallas_call(
        functools.partial(_linear_lrelu_kernel, negative_slope=negative_slope),
        out_shape=jax.ShapeDtypeStruct((B, N), out_dtype),
    )(x, w, b)


# ----------------------------------------------------------------------------
# Conv3x3 (pad=1) + folded-BN affine + activation kernels
# ----------------------------------------------------------------------------
def _fill_pad_cols(xpad_ref, *, T, W, Cin):
    zc = jnp.zeros((T + 2, 1, Cin), xpad_ref.dtype)
    xpad_ref[:, 0:1, :] = zc                 # left zero column
    xpad_ref[:, W + 1:W + 2, :] = zc         # right zero column


def _conv_compute(xpad_ref, w_ref, scale_ref, bias_ref, o_ref, *, T, W, Cin, Cout,
                  row_mode, negative_slope, use_tanh):
    """Conv on the zero-padded VMEM strip xpad (T+2, W+2, Cin) -> o (1, T*W, Cout)."""
    scale = scale_ref[...]
    bias = bias_ref[...]

    def act(v):
        return jnp.tanh(v) if use_tanh else jnp.where(v >= 0, v, negative_slope * v)

    if row_mode:
        # Tiny 2x2 / 4x4 / 8x8 layers only: per-output-row dots.
        for h in range(T):
            acc = jnp.zeros((W, Cout), jnp.float32)
            for dy in range(3):
                for dx in range(3):
                    acc = acc + jnp.dot(xpad_ref[h + dy, dx:dx + W, :],
                                        w_ref[3 * dy + dx],
                                        preferred_element_type=jnp.float32)
            y = act(acc * scale + bias)
            o_ref[0, h * W:(h + 1) * W, :] = y.astype(o_ref.dtype)
        return

    # Whole strip at once: M = T*W (up to 8192).  Only 3 dx-shifted relayouts of
    # the padded strip are materialized; the dy shift is a cheap aligned slice.
    acc = jnp.zeros((T * W, Cout), jnp.float32)
    for dx in range(3):
        sh = xpad_ref[:, dx:dx + W, :].reshape((T + 2) * W, Cin)
        for dy in range(3):
            acc = acc + jnp.dot(sh[dy * W:(dy + T) * W, :], w_ref[3 * dy + dx],
                                preferred_element_type=jnp.float32)
    y = act(acc * scale + bias)
    o_ref[0] = y.astype(o_ref.dtype)


def _conv_kernel(xprev_ref, xcur_ref, xnext_ref, w_ref, scale_ref, bias_ref,
                 o_ref, xpad_ref, *, T, W, Cin, Cout, n_strips, row_mode,
                 negative_slope, use_tanh):
    """Plain (non-upsampled) conv: current strip + one halo row above / below."""
    s = pl.program_id(1)
    _fill_pad_cols(xpad_ref, T=T, W=W, Cin=Cin)
    # TODO(synk): on v7x, DMA HBM directly into xpad (pl.ANY + make_async_copy)
    # to remove this VMEM->VMEM interior copy.
    xpad_ref[1:T + 1, 1:W + 1, :] = xcur_ref[0].astype(xpad_ref.dtype)

    prev_row = xprev_ref[0].astype(xpad_ref.dtype)            # (1, W, Cin)
    prev_row = jnp.where(s > 0, prev_row, jnp.zeros_like(prev_row))
    xpad_ref[0:1, 1:W + 1, :] = prev_row

    next_row = xnext_ref[0].astype(xpad_ref.dtype)
    next_row = jnp.where(s < n_strips - 1, next_row, jnp.zeros_like(next_row))
    xpad_ref[T + 1:T + 2, 1:W + 1, :] = next_row

    _conv_compute(xpad_ref, w_ref, scale_ref, bias_ref, o_ref, T=T, W=W, Cin=Cin,
                  Cout=Cout, row_mode=row_mode, negative_slope=negative_slope,
                  use_tanh=use_tanh)


def _upconv_kernel(xprev_ref, xcur_ref, xnext_ref, rep_ref, w_ref, scale_ref,
                   bias_ref, o_ref, xpad_ref, *, T, W, Cin, Cout, n_strips,
                   negative_slope, use_tanh):
    """Conv with the 2x nearest upsample fused in.

    The input arrives in pre-upsample resolution (T//2 rows + 1-row halos).
    Columns are duplicated with a 0/1 replication-matrix MXU dot, rows by
    storing each up-row twice into the padded VMEM strip.
    """
    s = pl.program_id(1)
    Tin = T // 2
    _fill_pad_cols(xpad_ref, T=T, W=W, Cin=Cin)
    rep = rep_ref[...]                                        # (W, W//2) bf16

    def up(row):                                              # (W//2, Cin) -> (W, Cin)
        return jnp.dot(rep, row,
                       preferred_element_type=jnp.float32).astype(xpad_ref.dtype)

    for u in range(Tin):
        r = up(xcur_ref[0, u, :, :])
        xpad_ref[1 + 2 * u, 1:W + 1, :] = r
        xpad_ref[2 + 2 * u, 1:W + 1, :] = r

    prev_up = up(xprev_ref[0, 0, :, :])
    prev_up = jnp.where(s > 0, prev_up, jnp.zeros_like(prev_up))
    xpad_ref[0, 1:W + 1, :] = prev_up

    next_up = up(xnext_ref[0, 0, :, :])
    next_up = jnp.where(s < n_strips - 1, next_up, jnp.zeros_like(next_up))
    xpad_ref[T + 1, 1:W + 1, :] = next_up

    _conv_compute(xpad_ref, w_ref, scale_ref, bias_ref, o_ref, T=T, W=W, Cin=Cin,
                  Cout=Cout, row_mode=False, negative_slope=negative_slope,
                  use_tanh=use_tanh)


def conv3x3_bn_act(x_nhwc, w9, scale, bias, *, fuse_upsample=False,
                   negative_slope=0.1, use_tanh=False, out_dtype=jnp.bfloat16):
    """3x3 conv (stride 1, pad 1) + per-channel affine (folded BN) + LeakyReLU/Tanh.

    Optionally fuses a preceding nearest-neighbour 2x upsample.
    """
    B, H_in, W_in, Cin = x_nhwc.shape
    Cout = w9.shape[-1]
    H = 2 * H_in if fuse_upsample else H_in            # output spatial size
    W = 2 * W_in if fuse_upsample else W_in

    # Output strip height per grid step.
    if H <= 64:
        T = H
    elif H <= 128:
        T = 64
    else:
        T = 32                                         # v7x-safe at 256^2
    n_strips = H // T
    T_in = T // 2 if fuse_upsample else T              # input rows per strip
    row_mode = (W % 16) != 0                           # only 2x2/4x4/8x8 maps

    # Current input strip + single halo rows above/below (clamped).
    prev_spec = pl.BlockSpec(
        (1, 1, W_in, Cin), lambda b, s: (b, jnp.maximum(s * T_in - 1, 0), 0, 0))
    cur_spec = pl.BlockSpec((1, T_in, W_in, Cin), lambda b, s: (b, s, 0, 0))
    next_spec = pl.BlockSpec(
        (1, 1, W_in, Cin),
        lambda b, s: (b, jnp.minimum((s + 1) * T_in, H_in - 1), 0, 0))
    w_spec = pl.BlockSpec((9, Cin, Cout), lambda b, s: (0, 0, 0))
    v_spec = pl.BlockSpec((1, Cout), lambda b, s: (0, 0))
    # Lane-dense flat output blocks; reshaped back to NHWC for free in the wrapper.
    out_spec = pl.BlockSpec((1, T * W, Cout), lambda b, s: (b, s, 0))

    kw = dict(T=T, W=W, Cin=Cin, Cout=Cout, n_strips=n_strips,
              negative_slope=negative_slope, use_tanh=use_tanh)
    if fuse_upsample:
        rep = (jnp.arange(W)[:, None] // 2 ==
               jnp.arange(W_in)[None, :]).astype(jnp.bfloat16)
        kernel = functools.partial(_upconv_kernel, **kw)
        in_specs = [prev_spec, cur_spec, next_spec,
                    pl.BlockSpec((W, W_in), lambda b, s: (0, 0)),
                    w_spec, v_spec, v_spec]
        args = (x_nhwc, x_nhwc, x_nhwc, rep, w9, scale, bias)
    else:
        kernel = functools.partial(_conv_kernel, row_mode=row_mode, **kw)
        in_specs = [prev_spec, cur_spec, next_spec, w_spec, v_spec, v_spec]
        args = (x_nhwc, x_nhwc, x_nhwc, w9, scale, bias)

    out = pl.pallas_call(
        kernel,
        out_shape=jax.ShapeDtypeStruct((B, H * W, Cout), out_dtype),
        grid=(B, n_strips),
        in_specs=in_specs,
        out_specs=out_spec,
        scratch_shapes=[pltpu.VMEM((T + 2, W + 2, Cin), jnp.bfloat16)],
        compiler_params=pltpu.CompilerParams(
            dimension_semantics=("parallel", "parallel"),
            vmem_limit_bytes=40 * 1024 * 1024),
    )(*args)
    return out.reshape(B, H, W, Cout)


# ----------------------------------------------------------------------------
# Decoder definition (mirrors the PyTorch nn.Sequential)
# ----------------------------------------------------------------------------
# (upsample_before_conv, cin, cout) -- cout=None means "n_channels" (final tanh, no BN)
CONV_CFGS = [
    (True, 512, 512),   # 1x1   -> 2x2
    (True, 512, 512),   # 2x2   -> 4x4
    (True, 512, 512),   # 4x4   -> 8x8
    (True, 512, 512),   # 8x8   -> 16x16
    (True, 512, 256),   # 16x16 -> 32x32
    (False, 256, 256),
    (True, 256, 128),   # 32x32 -> 64x64
    (False, 128, 128),
    (True, 128, 64),    # 64x64 -> 128x128
    (False, 64, 64),
    (True, 64, 64),     # 128x128 -> 256x256
    (False, 64, 64),
    (False, 64, None),  # -> n_channels, Tanh
]

BN_EPS = 1e-5


def init_params(key, latent_space, n_channels):
    params = {}
    key, kw, kb = jax.random.split(key, 3)
    params["lin_w"] = (jax.random.normal(kw, (latent_space, 512), jnp.float32)
                       / np.sqrt(latent_space))
    params["lin_b"] = jax.random.uniform(kb, (1, 512), jnp.float32, -0.05, 0.05)

    conv_w, scales, biases = [], [], []
    for (_, cin, cout) in CONV_CFGS:
        co = cout if cout is not None else n_channels
        key, kw, kb, kg, kbe, km, kv = jax.random.split(key, 7)
        w = jax.random.normal(kw, (3, 3, cin, co), jnp.float32) / np.sqrt(9 * cin)
        b = jax.random.uniform(kb, (co,), jnp.float32, -0.05, 0.05)
        if cout is not None:
            # BatchNorm (eval) folded: y = (conv + b - mean) * gamma/sqrt(var+eps) + beta
            gamma = jax.random.uniform(kg, (co,), jnp.float32, 0.8, 1.2)
            beta = jax.random.uniform(kbe, (co,), jnp.float32, -0.1, 0.1)
            mean = 0.1 * jax.random.normal(km, (co,), jnp.float32)
            var = jax.random.uniform(kv, (co,), jnp.float32, 0.5, 1.5)
            scale = gamma / jnp.sqrt(var + BN_EPS)
            bias = beta + (b - mean) * scale
        else:
            scale = jnp.ones((co,), jnp.float32)
            bias = b
        # (3,3,Cin,Cout) -> (9, Cin, Cout) so the kernel indexes w[3*dy+dx]; bf16 for MXU.
        conv_w.append(w.reshape(9, cin, co).astype(jnp.bfloat16))
        scales.append(scale.reshape(1, co))
        biases.append(bias.reshape(1, co))
    params["conv_w"] = conv_w
    params["scale"] = scales
    params["bias"] = biases
    return params


def decoder_forward(x, params):
    # decoder_linear: Linear(latent, 512) -> LeakyReLU(0.01) -> Dropout(0.2)
    h = linear_lrelu(x, params["lin_w"], params["lin_b"], negative_slope=0.01)
    # TODO(synk): Dropout(0.2) is identity at inference time; intentionally omitted.

    # .view(-1, 512, 1, 1) in NCHW == (B, 1, 1, 512) in NHWC; bf16 between conv layers.
    h = h.reshape(-1, 1, 1, 512)

    # TODO(synk): the first few 2x2-16x16 layers could be fused into a single
    # pallas_call with all weights resident in VMEM to cut launch overhead.
    n_layers = len(CONV_CFGS)
    for i, (up, _cin, _cout) in enumerate(CONV_CFGS):
        fuse = up and h.shape[2] >= 8          # fuse the 2x upsample when W_in >= 8
        if up and not fuse:
            # Tiny 1x1/2x2/4x4 maps: plain nearest upsample in the wrapper (<= 64 KiB).
            h = jnp.repeat(jnp.repeat(h, 2, axis=1), 2, axis=2)
        is_last = (i == n_layers - 1)
        h = conv3x3_bn_act(
            h,
            params["conv_w"][i],
            params["scale"][i],
            params["bias"][i],
            fuse_upsample=fuse,
            negative_slope=0.1,
            use_tanh=is_last,
            out_dtype=jnp.float32 if is_last else jnp.bfloat16,
        )
    # back to PyTorch NCHW convention.
    # TODO(synk): emitting NCHW (W lane-dense) directly from the last kernel would
    # make the Cout=3 stores lane-dense and drop this wrapper transpose.
    return jnp.transpose(h, (0, 3, 1, 2))


# ----------------------------------------------------------------------------
if __name__ == "__main__":
    key = jax.random.PRNGKey(0)
    B, latent_space, n_channels = 2, 32, 3

    pkey, xkey = jax.random.split(key)
    params = init_params(pkey, latent_space, n_channels)
    x = jax.random.normal(xkey, (B, latent_space), jnp.float32)

    out = decoder_forward(x, params)
    out = jax.block_until_ready(out)

    assert out.shape == (B, n_channels, 256, 256), out.shape
    assert bool(jnp.all(jnp.isfinite(out)))
    assert bool(jnp.all(jnp.abs(out) <= 1.0 + 1e-6))  # tanh output range
    print("KERNEL_OK")
</pallas_src>

<mosaic_0001>
module attributes {stable_mosaic.version = 11 : i64} {
  func.func @_linear_lrelu_kernel(%arg0: memref<2x32xf32, #tpu.memory_space<vmem>>, %arg1: memref<32x512xf32, #tpu.memory_space<vmem>>, %arg2: memref<1x512xf32, #tpu.memory_space<vmem>>, %arg3: memref<2x512xbf16, #tpu.memory_space<vmem>>) attributes {dimension_semantics = [], scalar_prefetch = 0 : i64, scratch_operands = 0 : i64, tpu.core_type = #tpu.core_type<tc>} {
    %c0 = arith.constant 0 : index
    %c0_0 = arith.constant 0 : index
    %0 = vector.load %arg0[%c0, %c0_0] : memref<2x32xf32, #tpu.memory_space<vmem>>, vector<2x32xf32>
    %c0_1 = arith.constant 0 : index
    %c0_2 = arith.constant 0 : index
    %1 = vector.load %arg1[%c0_1, %c0_2] : memref<32x512xf32, #tpu.memory_space<vmem>>, vector<32x512xf32>
    %cst = arith.constant dense<0.000000e+00> : vector<2x512xf32>
    %2 = tpu.matmul %0, %1, %cst {dimension_numbers = #tpu.dot_dimension_numbers<[1], [0], [0], [1], [0, 0, 1, 1], [], []>} : vector<2x32xf32>, vector<32x512xf32>, vector<2x512xf32> -> vector<2x512xf32>
    %c0_3 = arith.constant 0 : index
    %c0_4 = arith.constant 0 : index
    %3 = vector.load %arg2[%c0_3, %c0_4] : memref<1x512xf32, #tpu.memory_space<vmem>>, vector<1x512xf32>
    %4 = vector.broadcast %3 : vector<1x512xf32> to vector<2x512xf32>
    %5 = arith.addf %2, %4 : vector<2x512xf32>
    %cst_5 = arith.constant 0.000000e+00 : f32
    %6 = vector.broadcast %cst_5 : f32 to vector<2x512xf32>
    %7 = arith.cmpf oge, %5, %6 : vector<2x512xf32>
    %cst_6 = arith.constant 0.00999999977 : f32
    %8 = vector.broadcast %cst_6 : f32 to vector<2x512xf32>
    %9 = arith.mulf %8, %5 : vector<2x512xf32>
    %10 = arith.select %7, %5, %9 : vector<2x512xi1>, vector<2x512xf32>
    %11 = arith.truncf %10 : vector<2x512xf32> to vector<2x512xbf16>
    %c0_7 = arith.constant 0 : index
    %c0_8 = arith.constant 0 : index
    %12 = vector.load %arg3[%c0_7, %c0_8] : memref<2x512xbf16, #tpu.memory_space<vmem>>, vector<2x512xbf16>
    tpu.vector_store %arg3[%c0_7, %c0_8], %11 {strides = array<i32>} : memref<2x512xbf16, #tpu.memory_space<vmem>>, vector<2x512xbf16>,
    return
  }
}

</mosaic_0001>

<bundles_post_ra>
// kernel: tpu_custom_call.1
= control target key start
LH: loop header
LB: loop body
LE: loop exit
PB: predicated region body
PF: predicated region fallthrough
CT: control target
= control target key end

     0   :  { %8 = vsyncpa [#allocation3], 0  ;;  %s438_s0 = inlined_call_operand.hbm [shape: f32[2,32], index: 0, kind: input, shape index: {}]   ;;  %s439_s1 = inlined_call_operand.hbm [shape: f32[32,512], index: 1, kind: input, shape index: {}]   ;;  %s440_s2 = inlined_call_operand.hbm [shape: f32[1,512], index: 2, kind: input, shape index: {}]   ;;  %s441_s3 = inlined_call_operand.hbm [shape: bf16[2,512], index: 3, kind: output, shape index: {}]  }
   0x1   :  { %9 = vsyncpa [#allocation6], 0 }
   0x2   :  { %10 = vsyncpa [#allocation4], 0  ;;  %s398_s12 = smov [#allocation5]  }
   0x3   :  { %s26_s13 = sshll.u32 %s398_s12, 4  ;;  %s27_s13 = int_to_ptr.vmem [resolvable:$true] %s26_s13 }
   0x4   :  { %s320_s14 = scalar_lea.vmem %s27_s13, 2048  ;;  %p325_p1 = scmp.lt.s32.totalorder %s27_s13, %s27_s13 }
   0x5   :  { %p321_p0 = scmp.ne.s32.totalorder %s27_s13, %s320_s14  ;;  %p326_p2 = scmp.lt.s32.totalorder %s320_s14, %s320_s14 }
   0x7   :  { %p327_p3 = por %p326_p2, %p325_p1 }
   0x9   :  { %p328_p4 = pnand %p327_p3, %p321_p0 }
   0xb   :  { %331 = shalt.err (!%p328_p4)
}
   0xc   :  { %s399_s15 = smov 512   ;;  %s400_s16 = smov 32  }
   0xd   :  { %32 = dma.hbm_to_vmem [thread:$0]  %s439_s1, 2048, %s27_s13, [#allocation6], %s399_s15, %s399_s15, %s400_s16  }
   0xe   :  { %s401_s19 = smov [#allocation2]   ;;  %s402_s21 = smov [#allocation7]  }
   0xf   :  { %s17_s20 = sshll.u32 %s401_s19, 4  ;;  %s39_s22 = sshll.u32 %s402_s21, 4  ;;  %s18_s20 = int_to_ptr.vmem [resolvable:$true] %s17_s20  ;;  %s40_s22 = int_to_ptr.vmem [resolvable:$true] %s39_s22 }
  0x10   :  { %s340_s23 = scalar_lea.vmem %s18_s20, 32  ;;  %p345_p6 = scmp.lt.s32.totalorder %s18_s20, %s18_s20 }
  0x11   :  { %p341_p5 = scmp.ne.s32.totalorder %s18_s20, %s340_s23  ;;  %p346_p7 = scmp.lt.s32.totalorder %s340_s23, %s340_s23 }
  0x13   :  { %p347_p8 = por %p346_p7, %p345_p6 }
  0x15   :  { %p348_p9 = pnand %p347_p8, %p341_p5 }
  0x17   :  { %351 = shalt.err (!%p348_p9)
}
  0x18   :  { %20 = dma.hbm_to_vmem [thread:$0]  %s438_s0, 32, %s18_s20, [#allocation3]  }
  0x19   :  { %s360_s26 = scalar_lea.vmem %s40_s22, 64  ;;  %p365_p11 = scmp.lt.s32.totalorder %s40_s22, %s40_s22 }
  0x1a   :  { %p361_p10 = scmp.ne.s32.totalorder %s40_s22, %s360_s26  ;;  %p366_p12 = scmp.lt.s32.totalorder %s360_s26, %s360_s26 }
  0x1c   :  { %p367_p13 = por %p366_p12, %p365_p11 }
  0x1e   :  { %p368_p0 = pnand %p367_p13, %p361_p10 }
  0x20   :  { %371 = shalt.err (!%p368_p0)
}
  0x21   :  { %42 = dma.hbm_to_vmem [thread:$0]  %s440_s2, 64, %s40_s22, [#allocation6]  }
  0x22   :  { %392 = dma.done.wait [#allocation3], 32  }
  0x23   :  { %393 = vsyncadd [#allocation3], 4294967264 }
  0x24   :  { %394 = dma.done.wait [#allocation6], 2112  }
  0x25   :  { %395 = vsyncadd [#allocation6], 4294965184  ;;  %v403_v0 = vmov 0.0   ;;  %v66_v1 = vld [vmem:[#allocation5 + $0x68] sm:$0xff]  ;;  %v68_v2 = vld [vmem:[#allocation5 + $0x78] sm:$0xff]  ;;  %vm91_vm0 = vcmask 261120   ;;  %v71_v18 = vlaneseq }
  0x26   :  { %159 = vmatprep.mubr.f32.mxu0 %v403_v0  ;;  %230 = vmatprep.mubr.f32.mxu1 %v403_v0  ;;  %v65_v3 = vld [vmem:[#allocation5 + $0x60] sm:$0xff]  ;;  %v67_v4 = vld [vmem:[#allocation5 + $0x70] sm:$0xff]  ;;  %v62_v5 = vld [vmem:[#allocation5 + $0x48] sm:$0xff]  ;;  %v404_v27 = vmov 1966171168   ;;  %s405_s0 = smov [#allocation8]  }
  0x27   :  { %119 = vmatprep.subr.mxu0 %v66_v1  ;;  %190 = vmatprep.subr.mxu1 %v68_v2  ;;  %v64_v6 = vld [vmem:[#allocation5 + $0x58] sm:$0xff]  ;;  %v61_v7 = vld [vmem:[#allocation5 + $0x40] sm:$0xff]  ;;  %v63_v8 = vld [vmem:[#allocation5 + $0x50] sm:$0xff]  ;;  %v72_v19 = vshrl.u32 %v71_v18, 7  ;;  %v260_v28 = vunpack.c.l.s4 %v404_v27  ;;  %s289_s2 = sshll.u32 %s405_s0, 4  ;;  %s290_s2 = int_to_ptr.vmem [resolvable:$true] %s289_s2 }
  0x28   :  { %120 = vmatpush1.msra.mxu0 %v65_v3  ;;  %191 = vmatpush1.msra.mxu1 %v67_v4  ;;  %v58_v9 = vld [vmem:[#allocation5 + $0x28] sm:$0xff]  ;;  %v60_v10 = vld [vmem:[#allocation5 + $0x38] sm:$0xff]  ;;  %v57_v11 = vld [vmem:[#allocation5 + $0x20] sm:$0xff]  ;;  %s372_s28 = scalar_lea.vmem %s290_s2, 64  ;;  %p377_p2 = scmp.lt.s32.totalorder %s290_s2, %s290_s2 }
  0x29   :  { %121 = vmatprep.subr.mxu0 %v62_v5  ;;  %192 = vmatprep.subr.mxu1 %v64_v6  ;;  %v59_v12 = vld [vmem:[#allocation5 + $0x30] sm:$0xff]  ;;  %v54_v13 = vld [vmem:[#allocation5 + $0x8] sm:$0xff]  ;;  %v56_v14 = vld [vmem:[#allocation5 + $0x18] sm:$0xff]  ;;  %v73_v20 = vsub.s32 0, %v72_v19  ;;  %v81_v21 = vsub.s32 2, %v72_v19  ;;  %v77_v23 = vsub.s32 1, %v72_v19  ;;  %v261_v37 = vunpack.c.0.s8 %v260_v28  ;;  %p373_p1 = scmp.ne.s32.totalorder %s290_s2, %s372_s28  ;;  %p378_p3 = scmp.lt.s32.totalorder %s372_s28, %s372_s28 }
  0x2a   :  { %122 = vmatpush1.msra.mxu0 %v61_v7  ;;  %193 = vmatpush1.msra.mxu1 %v63_v8  ;;  %v53_v15 = vld [vmem:[#allocation5] sm:$0xff]  ;;  %v55_v16 = vld [vmem:[#allocation5 + $0x10] sm:$0xff]  ;;  %v52_v17 = vld [vmem:[#allocation2] sm:$0x3]  ;;  %v85_v24 = vsub.s32 3, %v72_v19 }
  0x2b   :  { %123 = vmatprep.subr.mxu0 %v58_v9  ;;  %194 = vmatprep.subr.mxu1 %v60_v10  ;;  %v69_v22 = vld [vmem:[#allocation7] sm:$0xf]  ;;  %v264_v44 = vsub.s32 %v261_v37, %v72_v19  ;;  %p379_p4 = por %p378_p3, %p377_p2 }
  0x2c   :  { %124 = vmatpush1.msra.mxu0 %v57_v11  ;;  %195 = vmatpush1.msra.mxu1 %v59_v12  ;;  %v74_v25 = vrot.slane %v69_v22, %v73_v20  ;;  %v82_v26 = vrot.slane %v69_v22, %v81_v21  ;;  %v78_v31 = vrot.slane %v69_v22, %v77_v23 }
  0x2d   :  { %125 = vmatprep.subr.mxu0 %v54_v13  ;;  %196 = vmatprep.subr.mxu1 %v56_v14  ;;  %v86_v32 = vrot.slane %v69_v22, %v85_v24  ;;  %p380_p5 = pnand %p379_p4, %p373_p1 }
  0x2e   :  { %126 = vmatpush1.msra.mxu0 %v53_v15  ;;  %197 = vmatpush1.msra.mxu1 %v55_v16 }
  0x2f   :  { %299 = vmatmul.mubr.msk.f32.vlgmr.msra.gmra.mxu0 %vm91_vm0, %v52_v17  ;;  %300 = vmatmul.mubr.msk.f32.vlgmr.msra.gmra.mxu1 %vm91_vm0, %v52_v17 }
  0xef   :  { %v161_v29 = vpop.f32.mrf.mxu0  ;;  %v232_v30 = vpop.f32.mrf.mxu1 }
  0xf0   :  { %v162_v33 = vadd.f32 %v161_v29, %v74_v25  ;;  %v233_v34 = vadd.f32 %v232_v30, %v82_v26 }
  0xf1   :  { %v163_v35 = vpop.f32.mrf.mxu0  ;;  %v234_v36 = vpop.f32.mrf.mxu1 }
  0xf2   :  { %v241_v38 = vmul.f32 0.01, %v162_v33  ;;  %v243_v39 = vmul.f32 0.01, %v233_v34  ;;  %v164_v40 = vadd.f32 %v163_v35, %v78_v31  ;;  %v235_v41 = vadd.f32 %v234_v36, %v86_v32 }
  0xf3   :  { %vm237_vm1 = vcmp.ge.f32.partialorder %v162_v33, 0.0  ;;  %vm239_vm2 = vcmp.ge.f32.partialorder %v233_v34, 0.0 }
  0xf4   :  { %vm238_vm3 = vcmp.ge.f32.partialorder %v164_v40, 0.0  ;;  %v242_v42 = vmul.f32 0.01, %v164_v40  ;;  %vm240_vm4 = vcmp.ge.f32.partialorder %v235_v41, 0.0  ;;  %v244_v43 = vmul.f32 0.01, %v235_v41 }
  0xf5   :  { %v245_v45 = vsel %vm237_vm1, %v162_v33, %v241_v38  ;;  %v247_v46 = vsel %vm239_vm2, %v233_v34, %v243_v39 }
  0xf6   :  { %v246_v47 = vsel %vm238_vm3, %v164_v40, %v242_v42  ;;  %v248_v48 = vsel %vm240_vm4, %v235_v41, %v244_v43 }
  0xf7   :  { %v301_v49 = vpack.c.bf16 %v246_v47, %v245_v45  ;;  %v302_v50 = vpack.c.bf16 %v248_v48, %v247_v46 }
  0xf9   :  { %v265_v51 = vrot.slane %v301_v49, %v264_v44  ;;  %v272_v52 = vrot.slane %v302_v50, %v264_v44 }
  0xfb   :  { %v273_v53 = vcombine.low %v265_v51, %v272_v52 }
  0xfd   :  { %303 = vst.sshfl [vmem:[#allocation8] sm:$0x55 pattern:$0x73625140] %v273_v53 }
  0xfe   :  { %383 = shalt.err (!%p380_p5)
}
  0xff   :  { %292 = dma.vmem_to_hbm [thread:$0]  %s290_s2, 64, %s441_s3, [#allocation4]  }
 0x100   :  { %396 = dma.done.wait [#allocation4], 64  }
 0x101   :  { %397 = vsyncadd [#allocation4], 4294967232 }
 0x102   :  { %296 = vsyncpa [#allocation3], 1 }
 0x103   :  { %297 = vsyncpa [#allocation6], 1 }
 0x104   :  { %298 = vsyncpa [#allocation4], 1 }

</bundles_post_ra>
